<compile_context>
chip_gen: v6e
topology: v6e:2x2x1
jax: 0.10.0
libtpu: 0.0.40
codegen_flags: <defaults>
</compile_context>

<pallas_src>
import math

import jax
import jax.numpy as jnp
from jax.experimental import pallas as pl
from jax.experimental.pallas import tpu as pltpu

_LANE = 128
_TILE_BYTES = 4 * 1024 * 1024        # per-stream VMEM tile (x2 buffers, x3 streams = 24 MiB)
_VMEM_LIMIT = 48 * 1024 * 1024       # explicit scoped-VMEM budget (fits v7x 64 MiB physical)


def make_positional_encoding(d_model: int, max_len: int = 5000,
                             dtype=jnp.float32) -> jnp.ndarray:
    """Deterministic construction of the `pe` buffer (matches torch __init__).

    max_len is padded up to a multiple of 128 so the flattened buffer is a
    clean (_, 128) slab view in forward (no HBM slice/copy of pe).  The extra
    rows use the same sin/cos formula and are never read for seq_len <= max_len.
    """
    max_len_p = ((max_len + _LANE - 1) // _LANE) * _LANE
    d_adj = d_model + d_model % 2
    position = jnp.arange(0, max_len_p, dtype=jnp.float32)[:, None]         # (max_len_p, 1)
    div_term = jnp.exp(
        jnp.arange(0, d_adj, 2, dtype=jnp.float32) * (-math.log(10000.0) / d_adj)
    )                                                                        # (d_adj//2,)
    angles = position * div_term                                             # (max_len_p, d_adj//2)
    pe = jnp.zeros((max_len_p, d_adj), dtype=jnp.float32)
    pe = pe.at[:, 0::2].set(jnp.sin(angles))
    pe = pe.at[:, 1::2].set(jnp.cos(angles))
    if d_model % 2 == 1:
        pe = pe[:, :d_model]
    return pe.astype(dtype)


def _add_pe_kernel(x_ref, pe_ref, o_ref):
    # Elementwise add of the positional-encoding tile; explicit cast on store.
    o_ref[...] = (x_ref[...] + pe_ref[...]).astype(o_ref.dtype)


def positional_encoding_forward(x: jnp.ndarray, pe: jnp.ndarray,
                                *, donate_x: bool = False) -> jnp.ndarray:
    """forward(x) = x + pe[:x.shape[0]]  for x of shape (seq_len, d_model)."""
    seq_len, d_model = x.shape
    if seq_len > pe.shape[0]:
        raise ValueError(f"seq_len={seq_len} exceeds pe max_len={pe.shape[0]}")
    if pe.dtype != x.dtype:
        # Prefer building pe in the activation dtype at init (no per-call
        # traffic); this cast is only a correctness fallback.
        pe = pe.astype(x.dtype)

    itemsize = x.dtype.itemsize
    sub = max(8, 32 // itemsize)          # sublane multiple: 8 f32, 16 bf16, 32 int8
    flat = seq_len * d_model

    # Tiny inputs: fixed custom-call + pipeline setup cost dominates.
    if flat < sub * _LANE:
        return x + pe[:seq_len]

    cost = pl.CostEstimate(flops=flat, transcendentals=0,
                           bytes_accessed=3 * flat * itemsize)
    params = pltpu.CompilerParams(dimension_semantics=("parallel",),
                                  vmem_limit_bytes=_VMEM_LIMIT)

    # ---------- lane-dense path: present a (rows, 128) slab -----------------
    if flat % _LANE == 0:
        rows = flat // _LANE                                  # >= sub (early-out above)
        x2 = x.reshape(rows, _LANE)

        target = max(sub, (_TILE_BYTES // (_LANE * itemsize)) // sub * sub)
        blk = min(target, (rows // sub) * sub)                # multiple of sub

        if (pe.shape[0] * d_model) % _LANE == 0:
            pe2 = pe.reshape(-1, _LANE)                       # full buffer, zero-copy view
        else:
            # Only reachable for externally built pe; materializes a copy.
            pe2 = pe.reshape(-1)[:rows * _LANE].reshape(rows, _LANE)

        extra = {"input_output_aliases": {0: 0}} if donate_x else {}
        out = pl.pallas_call(
            _add_pe_kernel,
            out_shape=jax.ShapeDtypeStruct((rows, _LANE), x.dtype),
            grid=(pl.cdiv(rows, blk),),
            in_specs=[pl.BlockSpec((blk, _LANE), lambda i: (i, 0)),
                      pl.BlockSpec((blk, _LANE), lambda i: (i, 0))],
            out_specs=pl.BlockSpec((blk, _LANE), lambda i: (i, 0)),
            compiler_params=params,
            cost_estimate=cost,
            **extra,
        )(x2, pe2)
        return out.reshape(seq_len, d_model)

    # ---------- fallback: keep (seq, d_model), tile over seq rows -----------
    target_rows = max(sub, min(2048, (_TILE_BYTES // (d_model * itemsize)) // sub * sub))
    if seq_len >= sub:
        blk = min(target_rows, (seq_len // sub) * sub)        # multiple of sub
        pe_in = pe                                            # rows picked by index_map
    else:
        blk = seq_len                                         # full-array block
        pe_in = pe[:seq_len]

    return pl.pallas_call(
        _add_pe_kernel,
        out_shape=jax.ShapeDtypeStruct((seq_len, d_model), x.dtype),
        grid=(pl.cdiv(seq_len, blk),),
        in_specs=[pl.BlockSpec((blk, d_model), lambda i: (i, 0)),
                  pl.BlockSpec((blk, d_model), lambda i: (i, 0))],
        out_specs=pl.BlockSpec((blk, d_model), lambda i: (i, 0)),
        compiler_params=params,
        cost_estimate=cost,
    )(x, pe_in)


if __name__ == "__main__":
    key = jax.random.PRNGKey(0)
    k1, k2, k3, k4 = jax.random.split(key, 4)

    # Primary small example (lane-dense kernel path): seq=64, d_model=32.
    seq_len, d_model, max_len = 64, 32, 128
    x = jax.random.normal(k1, (seq_len, d_model), dtype=jnp.float32)
    pe = make_positional_encoding(d_model, max_len=max_len)
    out = jax.block_until_ready(positional_encoding_forward(x, pe))
    ref = x + pe[:seq_len]
    assert out.shape == (seq_len, d_model)
    assert out.dtype == x.dtype
    assert jnp.allclose(out, ref, atol=1e-6), "mismatch vs reference (f32 small)"

    # Tiny input: early-out XLA path, same semantics.
    xt = jax.random.normal(k2, (8, d_model), dtype=jnp.float32)
    outt = jax.block_until_ready(positional_encoding_forward(xt, pe))
    assert jnp.allclose(outt, xt + pe[:8], atol=1e-6), "mismatch (tiny early-out)"

    # Multi-block pipelined lane-dense path (grid > 1, 4 MiB tiles, no-copy pe).
    s2, d2, m2 = 8192, 256, 8192
    x2 = jax.random.normal(k3, (s2, d2), dtype=jnp.float32)
    pe_big = make_positional_encoding(d2, max_len=m2)
    out2 = jax.block_until_ready(positional_encoding_forward(x2, pe_big))
    assert jnp.allclose(out2, x2 + pe_big[:s2], atol=1e-5), "mismatch (f32 tiled)"

    # bf16: pe built in the activation dtype (no per-call cast, half the pe stream).
    s3, d3, m3 = 64, 64, 128
    x3 = jax.random.normal(k4, (s3, d3), dtype=jnp.float32).astype(jnp.bfloat16)
    pe_bf = make_positional_encoding(d3, max_len=m3, dtype=jnp.bfloat16)
    out3 = jax.block_until_ready(positional_encoding_forward(x3, pe_bf))
    assert jnp.allclose(out3.astype(jnp.float32),
                        (x3 + pe_bf[:s3]).astype(jnp.float32),
                        atol=1e-2), "mismatch vs reference (bf16)"

    # Odd d_model -> fallback (seq, d_model) row-tiled path (truncated pe column).
    x4 = jax.random.normal(k1, (32, 33), dtype=jnp.float32)
    pe_odd = make_positional_encoding(33, max_len=64)
    out4 = jax.block_until_ready(positional_encoding_forward(x4, pe_odd))
    assert jnp.allclose(out4, x4 + pe_odd[:32], atol=1e-6), "mismatch (odd d_model)"

    print("KERNEL_OK")
</pallas_src>

<mosaic_0001>
module attributes {stable_mosaic.version = 11 : i64} {
  func.func @_add_pe_kernel(%arg0: i32, %arg1: memref<16x128xf32, #tpu.memory_space<vmem>>, %arg2: memref<16x128xf32, #tpu.memory_space<vmem>>, %arg3: memref<16x128xf32, #tpu.memory_space<vmem>>) attributes {dimension_semantics = [#tpu.dimension_semantics<parallel>], iteration_bounds = array<i64: 1>, scalar_prefetch = 0 : i64, scratch_operands = 0 : i64, tpu.core_type = #tpu.core_type<tc>, window_params = [{transform_indices = @transform_0, window_bounds = array<i64: 16, 128>}, {transform_indices = @transform_1, window_bounds = array<i64: 16, 128>}, {transform_indices = @transform_2, window_bounds = array<i64: 16, 128>}]} {
    %c0 = arith.constant 0 : index
    %c0_0 = arith.constant 0 : index
    %0 = vector.load %arg1[%c0, %c0_0] : memref<16x128xf32, #tpu.memory_space<vmem>>, vector<16x128xf32>
    %c0_1 = arith.constant 0 : index
    %c0_2 = arith.constant 0 : index
    %1 = vector.load %arg2[%c0_1, %c0_2] : memref<16x128xf32, #tpu.memory_space<vmem>>, vector<16x128xf32>
    %2 = arith.addf %0, %1 : vector<16x128xf32>
    %c0_3 = arith.constant 0 : index
    %c0_4 = arith.constant 0 : index
    %3 = vector.load %arg3[%c0_3, %c0_4] : memref<16x128xf32, #tpu.memory_space<vmem>>, vector<16x128xf32>
    tpu.vector_store %arg3[%c0_3, %c0_4], %2 {strides = array<i32>} : memref<16x128xf32, #tpu.memory_space<vmem>>, vector<16x128xf32>,
    return
  }
  func.func @transform_0(%arg0: i32) -> (i32, i32) {
    %c0_i32 = arith.constant 0 : i32
    %c0_i32_0 = arith.constant 0 : i32
    return %arg0, %c0_i32 : i32, i32
  }
  func.func @transform_1(%arg0: i32) -> (i32, i32) {
    %c0_i32 = arith.constant 0 : i32
    %c0_i32_0 = arith.constant 0 : i32
    return %arg0, %c0_i32 : i32, i32
  }
  func.func @transform_2(%arg0: i32) -> (i32, i32) {
    %c0_i32 = arith.constant 0 : i32
    %c0_i32_0 = arith.constant 0 : i32
    return %arg0, %c0_i32 : i32, i32
  }
}

</mosaic_0001>

<bundles_post_ra>
// kernel: tpu_custom_call.1
= control target key start
LH: loop header
LB: loop body
LE: loop exit
PB: predicated region body
PF: predicated region fallthrough
CT: control target
= control target key end

     0   :  { %7 = vsyncpa [#allocation3], 0  ;;  %s175_s0 = inlined_call_operand.hbm [shape: f32[16,128], index: 0, kind: input, shape index: {}]   ;;  %s176_s1 = inlined_call_operand.hbm [shape: f32[32,128], index: 1, kind: input, shape index: {}]   ;;  %s177_s2 = inlined_call_operand.hbm [shape: f32[16,128], index: 2, kind: output, shape index: {}]  }
   0x1   :  { %8 = vsyncpa [#allocation6], 0 }
   0x2   :  { %9 = vsyncpa [#allocation4], 0  ;;  %s137_s9 = smov [#allocation2]  }
   0x3   :  { %s15_s10 = sshll.u32 %s137_s9, 4  ;;  %s16_s10 = int_to_ptr.vmem [resolvable:$true] %s15_s10 }
   0x4   :  { %s79_s11 = scalar_lea.vmem %s16_s10, 256  ;;  %p84_p1 = scmp.lt.s32.totalorder %s16_s10, %s16_s10 }
   0x5   :  { %p80_p0 = scmp.ne.s32.totalorder %s16_s10, %s79_s11  ;;  %p85_p2 = scmp.lt.s32.totalorder %s79_s11, %s79_s11 }
   0x7   :  { %p86_p3 = por %p85_p2, %p84_p1 }
   0x9   :  { %p87_p4 = pnand %p86_p3, %p80_p0 }
   0xb   :  { %90 = shalt.err (!%p87_p4)
}
   0xc   :  { %s138_s12 = smov 128   ;;  %s139_s13 = smov 8  }
   0xd   :  { %21 = dma.hbm_to_vmem [thread:$0]  %s175_s0, 256, %s16_s10, [#allocation3], %s138_s12, %s138_s12, %s139_s13  }
   0xe   :  { %s140_s16 = smov [#allocation5]  }
   0xf   :  { %s27_s17 = sshll.u32 %s140_s16, 4  ;;  %s28_s17 = int_to_ptr.vmem [resolvable:$true] %s27_s17 }
  0x10   :  { %s99_s18 = scalar_lea.vmem %s28_s17, 256  ;;  %p104_p6 = scmp.lt.s32.totalorder %s28_s17, %s28_s17 }
  0x11   :  { %p100_p5 = scmp.ne.s32.totalorder %s28_s17, %s99_s18  ;;  %p105_p7 = scmp.lt.s32.totalorder %s99_s18, %s99_s18 }
  0x13   :  { %p106_p8 = por %p105_p7, %p104_p6 }
  0x15   :  { %p107_p9 = pnand %p106_p8, %p100_p5 }
  0x17   :  { %110 = shalt.err (!%p107_p9)
}
  0x18   :  { %33 = dma.hbm_to_vmem [thread:$0]  %s176_s1, 256, %s28_s17, [#allocation6], %s138_s12, %s138_s12, %s139_s13  }
  0x19   :  { %131 = dma.done.wait [#allocation3], 256  }
  0x1a   :  { %132 = vsyncadd [#allocation3], 4294967040 }
  0x1b   :  { %133 = dma.done.wait [#allocation6], 256  }
  0x1c   :  { %134 = vsyncadd [#allocation6], 4294967040  ;;  %s141_s0 = smov [#allocation7]   ;;  %v40_v0 = vld [vmem:[#allocation2] sm:$0xff]  ;;  %v42_v1 = vld [vmem:[#allocation5] sm:$0xff] }
  0x1d   :  { %s53_s21 = sshll.u32 %s141_s0, 4  ;;  %v41_v2 = vld [vmem:[#allocation2 + $0x8] sm:$0xff]  ;;  %v44_v3 = vadd.f32 %v42_v1, %v40_v0  ;;  %v43_v4 = vld [vmem:[#allocation5 + $0x8] sm:$0xff]  ;;  %s54_s21 = int_to_ptr.vmem [resolvable:$true] %s53_s21 }
  0x1e   :  { %v45_v5 = vadd.f32 %v43_v4, %v41_v2  ;;  %s111_s22 = scalar_lea.vmem %s54_s21, 256  ;;  %p116_p11 = scmp.lt.s32.totalorder %s54_s21, %s54_s21 }
  0x1f   :  { %46 = vst [vmem:[#allocation7] sm:$0xff] %v44_v3  ;;  %p112_p10 = scmp.ne.s32.totalorder %s54_s21, %s111_s22  ;;  %p117_p12 = scmp.lt.s32.totalorder %s111_s22, %s111_s22 }
  0x20   :  { %47 = vst [vmem:[#allocation7 + $0x8] sm:$0xff] %v45_v5 }
  0x21   :  { %p118_p13 = por %p117_p12, %p116_p11 }
  0x23   :  { %p119_p0 = pnand %p118_p13, %p112_p10 }
  0x25   :  { %122 = shalt.err (!%p119_p0)
}
  0x26   :  { %59 = dma.vmem_to_hbm [thread:$0]  %s54_s21, 256, %s177_s2, [#allocation4], %s138_s12, %s138_s12, %s139_s13  }
  0x27   :  { %135 = dma.done.wait [#allocation4], 256  }
  0x28   :  { %136 = vsyncadd [#allocation4], 4294967040 }
  0x29   :  { %63 = vsyncpa [#allocation3], 1 }
  0x2a   :  { %64 = vsyncpa [#allocation6], 1 }
  0x2b   :  { %65 = vsyncpa [#allocation4], 1 }

</bundles_post_ra>
